<compile_context>
chip_gen: v7x
topology: tpu7x:2x2x1
jax: 0.10.0
libtpu: 0.0.40
codegen_flags: <defaults>
</compile_context>

<pallas_src>
import jax
import jax.numpy as jnp
from jax.experimental import pallas as pl
from jax.experimental.pallas import tpu as pltpu

EPS = 1e-6


def _round_up(n, m):
    return ((n + m - 1) // m) * m


def _reference(x, w, b, gamma, beta, matmul_dtype=jnp.float32):
    """Pure-JAX forward (torch semantics). Also the XLA fallback for lane-sparse H."""
    xf = x.astype(jnp.float32)
    H = xf.shape[-1]
    mean = jnp.mean(xf, axis=-1, keepdims=True)
    c = xf - mean
    std = jnp.sqrt(jnp.sum(c * c, axis=-1, keepdims=True) / (H - 1))   # unbiased (torch.std)
    normed = gamma.astype(jnp.float32) * c / (std + EPS) + beta.astype(jnp.float32)
    sub = jnp.dot(normed.astype(matmul_dtype), w.astype(matmul_dtype),
                  preferred_element_type=jnp.float32) + b.astype(jnp.float32)
    return (xf + sub).astype(x.dtype)


def _sublayer_connection_kernel(x_ref, w_ref, b_ref, gb_ref, o_ref, normed_ref):
    j = pl.program_id(1)                      # weight-column tile index (innermost)
    tn = o_ref.shape[-1]

    # ---- LayerNorm once per row tile; reused across all column tiles ----
    @pl.when(j == 0)
    def _():
        x = x_ref[...].astype(jnp.float32)    # f32 elementwise (v5e VPU has no bf16)
        h = x.shape[-1]
        mean = jnp.mean(x, axis=-1, keepdims=True)
        c = x - mean
        var_unbiased = jnp.sum(c * c, axis=-1, keepdims=True) * (1.0 / (h - 1))
        d = jnp.sqrt(var_unbiased) + EPS      # torch: eps added to the *std*
        inv = pl.reciprocal(d, approx=True)   # EUP slot, off the VALU critical path
        inv = inv * (2.0 - d * inv)           # one Newton step -> near-exact inv-std
        gb = gb_ref[...].astype(jnp.float32)  # (2, H): [gamma; beta]
        normed = gb[0:1, :] * (c * inv) + gb[1:2, :]
        normed_ref[...] = normed.astype(normed_ref.dtype)   # stored in matmul dtype

    # ---- Sublayer Linear(H, H) on the MXU: bf16 x bf16, f32 accumulation ----
    sub = jnp.dot(normed_ref[...], w_ref[...], preferred_element_type=jnp.float32)
    sub = sub + b_ref[...].astype(jnp.float32)

    # ---- dropout (eval mode: identity) + residual against the matching x columns ----
    col0 = pl.multiple_of(j * tn, tn)
    x_cols = x_ref[:, pl.ds(col0, tn)].astype(jnp.float32)
    o_ref[...] = (x_cols + sub).astype(o_ref.dtype)


def sublayer_connection(x, w, b, gamma, beta, *, matmul_dtype=jnp.bfloat16,
                        target_tile_bytes=1 << 20):
    """out = x + Linear(LayerNorm(x))  (dropout in inference mode).

    x: (B, S, H).  w: (H, H) laid out as (in, out) -- transpose torch nn.Linear
    weights before calling.  b / gamma / beta: (H,).
    """
    B, S, H = x.shape
    rows = B * S
    assert w.shape == (H, H) and b.shape == (H,)
    assert gamma.shape == (H,) and beta.shape == (H,)
    if H < 2:
        raise ValueError("H must be >= 2 (torch unbiased std divides by H-1)")

    # Lane-sparse H: every VPU op / store would use only H%128 of 128 lanes and the
    # output store lowers to masked vst.msk -- plain XLA wins, dispatch there.
    if H % 128 != 0:
        return _reference(x, w, b, gamma, beta, matmul_dtype)

    x_item = jnp.dtype(x.dtype).itemsize
    w_item = jnp.dtype(matmul_dtype).itemsize

    # ---- generation-aware VMEM budget (v5e/v6e 128 MiB, v7x 64 MiB per TC) ----
    try:
        vmem_cap = pltpu.get_tpu_info().vmem_capacity_bytes
    except Exception:
        vmem_cap = 64 << 20                    # most conservative (v7x)
    budget = int(0.75 * vmem_cap)

    # ---- weight column tiling: (H, tn) weight tile within half the budget ----
    tn = None
    for cand in [H] + [c for c in (4096, 2048, 1024, 512, 256, 128)
                       if c < H and H % c == 0]:
        w_bufs = 1 if cand == H else 2         # column-tiled weight is double-buffered
        if w_bufs * H * cand * w_item <= budget // 2:
            tn = cand
            break
    if tn is None:
        raise ValueError(f"H={H}: even one (H, 128) weight column tile exceeds the "
                         f"{budget >> 20} MiB VMEM budget")
    num_col_tiles = H // tn

    # ---- byte-based row tile (~1 MiB of x), 8-aligned, clamped to problem/VMEM ----
    tm = _round_up(max(target_tile_bytes // (H * x_item), 8), 8)
    tm = max(256, min(tm, 2048))
    tm = min(tm, _round_up(rows, 8))
    if rows > 8:                               # v7x: keep >=2 row tiles for its 2 TCs
        tm = min(tm, _round_up(pl.cdiv(rows, 2), 8))
    tm = max(tm, 8)

    def _footprint(tm_):
        return (H * tn * w_item * (1 if num_col_tiles == 1 else 2)   # weight tile(s)
                + 2 * tm_ * H * x_item          # x tile, double-buffered
                + 2 * tm_ * tn * x_item         # out tile, double-buffered
                + tm_ * H * w_item              # LayerNorm scratch
                + 2 * (tn + 2 * H) * 4)         # bias + gamma/beta
    while tm > 8 and _footprint(tm) > budget:
        tm = max(8, _round_up(tm // 2, 8))

    # Ragged last row tile handled by Pallas (no wrapper pad / slice copies).
    grid = (pl.cdiv(rows, tm), num_col_tiles)

    x2 = x.reshape(rows, H)                     # metadata-only reshape
    w_mx = w if w.dtype == matmul_dtype else w.astype(matmul_dtype)   # cast once
    b2 = b.reshape(1, H)
    gb2 = jnp.stack([gamma, beta])              # (2, H): single resident param block

    cost = pl.CostEstimate(
        flops=2 * rows * H * H,
        transcendentals=rows,
        bytes_accessed=2 * rows * H * x_item + H * H * w_item + 3 * H * 4,
    )

    def _spec(shape, imap, mode=None):
        if mode is None:
            return pl.BlockSpec(shape, imap)
        return pl.BlockSpec(shape, imap, pipeline_mode=mode)

    def _run(single_buffer_resident):
        resident = pl.Buffered(1) if single_buffer_resident else None
        w_mode = resident if num_col_tiles == 1 else None
        return pl.pallas_call(
            _sublayer_connection_kernel,
            out_shape=jax.ShapeDtypeStruct((rows, H), x.dtype),
            grid_spec=pltpu.PrefetchScalarGridSpec(
                num_scalar_prefetch=0,
                grid=grid,
                in_specs=[
                    _spec((tm, H), lambda i, j: (i, 0)),            # x row tile
                    _spec((H, tn), lambda i, j: (0, j), w_mode),    # sublayer weight
                    _spec((1, tn), lambda i, j: (0, j)),            # sublayer bias cols
                    _spec((2, H), lambda i, j: (0, 0), resident),   # gamma / beta
                ],
                out_specs=pl.BlockSpec((tm, tn), lambda i, j: (i, j)),
                scratch_shapes=[pltpu.VMEM((tm, H), matmul_dtype)],  # LayerNorm scratch
            ),
            compiler_params=pltpu.CompilerParams(
                dimension_semantics=("parallel", "arbitrary"),
                vmem_limit_bytes=int(budget),
            ),
            cost_estimate=cost,
        )(x2, w_mx, b2, gb2)

    try:
        out2 = _run(True)
    except Exception:
        # TODO(synk): pl.Buffered(1) single-buffering of resident params rejected by
        # this jax build -- rerun with default double-buffering.
        out2 = _run(False)

    return out2.reshape(B, S, H)


if __name__ == "__main__":
    # Lane-dense hidden size (multiple of 128) so the optimized Pallas path runs;
    # rows = 16 -> two 8-row tiles (exercises the multi-tile / 2-TC path).
    B, S, H = 2, 8, 128

    key = jax.random.PRNGKey(0)
    kx, kw, kb = jax.random.split(key, 3)

    x = jax.random.normal(kx, (B, S, H), dtype=jnp.float32)

    # LayerNorm params exactly as in the module __init__: ones / zeros.
    gamma = jnp.ones((H,), dtype=jnp.float32)      # a_2
    beta = jnp.zeros((H,), dtype=jnp.float32)      # b_2
    # Deterministic sublayer (Linear H->H) params, (in, out) layout.
    w = jax.random.normal(kw, (H, H), dtype=jnp.float32) * (H ** -0.5)
    b = jax.random.normal(kb, (H,), dtype=jnp.float32) * 0.02

    out = jax.block_until_ready(sublayer_connection(x, w, b, gamma, beta))

    ref = _reference(x, w, b, gamma, beta, matmul_dtype=jnp.bfloat16)
    assert out.shape == (B, S, H)
    assert bool(jnp.all(jnp.isfinite(out)))
    # Tolerance covers bf16 MXU operands (f32 accumulation) + refined reciprocal.
    assert jnp.allclose(out, ref, atol=2e-2, rtol=2e-2), "mismatch vs reference"

    print("KERNEL_OK")
</pallas_src>

<mosaic_0001>
module attributes {stable_mosaic.version = 11 : i64} {
  func.func @_sublayer_connection_kernel(%arg0: i32, %arg1: i32, %arg2: memref<8x128xf32, #tpu.memory_space<vmem>>, %arg3: memref<128x128xbf16, #tpu.memory_space<vmem>>, %arg4: memref<1x128xf32, #tpu.memory_space<vmem>>, %arg5: memref<2x128xf32, #tpu.memory_space<vmem>>, %arg6: memref<8x128xf32, #tpu.memory_space<vmem>>, %arg7: memref<8x128xbf16, #tpu.memory_space<vmem>>) attributes {dimension_semantics = [#tpu.dimension_semantics<parallel>, #tpu.dimension_semantics<arbitrary>], iteration_bounds = array<i64: 2, 1>, scalar_prefetch = 0 : i64, scratch_operands = 1 : i64, tpu.core_type = #tpu.core_type<tc>, window_params = [{transform_indices = @transform_0, window_bounds = array<i64: 8, 128>}, {pipeline_mode = #tpu.pipeline_mode<synchronous>, transform_indices = @transform_1, window_bounds = array<i64: 128, 128>}, {transform_indices = @transform_2, window_bounds = array<i64: 1, 128>}, {pipeline_mode = #tpu.pipeline_mode<synchronous>, transform_indices = @transform_3, window_bounds = array<i64: 2, 128>}, {transform_indices = @transform_4, window_bounds = array<i64: 8, 128>}]} {
    %c0_i32 = arith.constant 0 : i32
    %0 = arith.cmpi eq, %arg1, %c0_i32 : i32
    %1 = arith.extui %0 : i1 to i32
    %c0_i32_0 = arith.constant 0 : i32
    %2 = arith.cmpi ne, %1, %c0_i32_0 : i32
    scf.if %2 {
      %c0_9 = arith.constant 0 : index
      %c0_10 = arith.constant 0 : index
      %15 = vector.load %arg2[%c0_9, %c0_10] : memref<8x128xf32, #tpu.memory_space<vmem>>, vector<8x128xf32>
      %cst_11 = arith.constant dense<0.000000e+00> : vector<8xf32>
      %16 = vector.multi_reduction <add>, %15, %cst_11 [1] : vector<8x128xf32> to vector<8xf32>
      %17 = vector.shape_cast %16 : vector<8xf32> to vector<8x1xf32>
      %cst_12 = arith.constant 1.280000e+02 : f32
      %18 = vector.broadcast %cst_12 : f32 to vector<8x1xf32>
      %19 = arith.divf %17, %18 : vector<8x1xf32>
      %20 = vector.broadcast %19 : vector<8x1xf32> to vector<8x128xf32>
      %21 = arith.subf %15, %20 : vector<8x128xf32>
      %22 = arith.mulf %21, %21 : vector<8x128xf32>
      %cst_13 = arith.constant dense<0.000000e+00> : vector<8xf32>
      %23 = vector.multi_reduction <add>, %22, %cst_13 [1] : vector<8x128xf32> to vector<8xf32>
      %24 = vector.shape_cast %23 : vector<8xf32> to vector<8x1xf32>
      %cst_14 = arith.constant 0.00787401571 : f32
      %25 = vector.broadcast %cst_14 : f32 to vector<8x1xf32>
      %26 = arith.mulf %24, %25 : vector<8x1xf32>
      %27 = math.sqrt %26 : vector<8x1xf32>
      %cst_15 = arith.constant 9.99999997E-7 : f32
      %28 = vector.broadcast %cst_15 : f32 to vector<8x1xf32>
      %29 = arith.addf %27, %28 : vector<8x1xf32>
      %30 = tpu.reciprocal %29 {approx = true} : vector<8x1xf32> -> vector<8x1xf32>
      %31 = arith.mulf %29, %30 : vector<8x1xf32>
      %cst_16 = arith.constant 2.000000e+00 : f32
      %32 = vector.broadcast %cst_16 : f32 to vector<8x1xf32>
      %33 = arith.subf %32, %31 : vector<8x1xf32>
      %34 = arith.mulf %30, %33 : vector<8x1xf32>
      %c0_17 = arith.constant 0 : index
      %c0_18 = arith.constant 0 : index
      %35 = vector.load %arg5[%c0_17, %c0_18] : memref<2x128xf32, #tpu.memory_space<vmem>>, vector<2x128xf32>
      %36 = vector.extract_strided_slice %35 {offsets = [0, 0], sizes = [1, 128], strides = [1, 1]} : vector<2x128xf32> to vector<1x128xf32>
      %37 = vector.broadcast %34 : vector<8x1xf32> to vector<8x128xf32>
      %38 = arith.mulf %21, %37 : vector<8x128xf32>
      %39 = vector.broadcast %36 : vector<1x128xf32> to vector<8x128xf32>
      %40 = arith.mulf %39, %38 : vector<8x128xf32>
      %41 = vector.extract_strided_slice %35 {offsets = [1, 0], sizes = [1, 128], strides = [1, 1]} : vector<2x128xf32> to vector<1x128xf32>
      %42 = vector.broadcast %41 : vector<1x128xf32> to vector<8x128xf32>
      %43 = arith.addf %40, %42 : vector<8x128xf32>
      %44 = arith.truncf %43 : vector<8x128xf32> to vector<8x128xbf16>
      %c0_19 = arith.constant 0 : index
      %c0_20 = arith.constant 0 : index
      %45 = vector.load %arg7[%c0_19, %c0_20] : memref<8x128xbf16, #tpu.memory_space<vmem>>, vector<8x128xbf16>
      tpu.vector_store %arg7[%c0_19, %c0_20], %44 {strides = array<i32>} : memref<8x128xbf16, #tpu.memory_space<vmem>>, vector<8x128xbf16>,
    } else {
    }
    %c0 = arith.constant 0 : index
    %c0_1 = arith.constant 0 : index
    %3 = vector.load %arg7[%c0, %c0_1] : memref<8x128xbf16, #tpu.memory_space<vmem>>, vector<8x128xbf16>
    %c0_2 = arith.constant 0 : index
    %c0_3 = arith.constant 0 : index
    %4 = vector.load %arg3[%c0_2, %c0_3] : memref<128x128xbf16, #tpu.memory_space<vmem>>, vector<128x128xbf16>
    %cst = arith.constant dense<0.000000e+00> : vector<8x128xf32>
    %5 = tpu.matmul %3, %4, %cst {dimension_numbers = #tpu.dot_dimension_numbers<[1], [0], [0], [1], [0, 0, 1, 1], [], []>} : vector<8x128xbf16>, vector<128x128xbf16>, vector<8x128xf32> -> vector<8x128xf32>
    %c0_4 = arith.constant 0 : index
    %c0_5 = arith.constant 0 : index
    %6 = vector.load %arg4[%c0_4, %c0_5] : memref<1x128xf32, #tpu.memory_space<vmem>>, vector<1x128xf32>
    %7 = vector.broadcast %6 : vector<1x128xf32> to vector<8x128xf32>
    %8 = arith.addf %5, %7 : vector<8x128xf32>
    %c128_i32 = arith.constant 128 : i32
    %9 = arith.muli %arg1, %c128_i32 : i32
    %10 = tpu.assume_multiple %9, 128 : i32
    %c0_6 = arith.constant 0 : index
    %11 = arith.index_cast %10 : i32 to index
    %12 = vector.load %arg2[%c0_6, %11] : memref<8x128xf32, #tpu.memory_space<vmem>>, vector<8x128xf32>
    %13 = arith.addf %12, %8 : vector<8x128xf32>
    %c0_7 = arith.constant 0 : index
    %c0_8 = arith.constant 0 : index
    %14 = vector.load %arg6[%c0_7, %c0_8] : memref<8x128xf32, #tpu.memory_space<vmem>>, vector<8x128xf32>
    tpu.vector_store %arg6[%c0_7, %c0_8], %13 {strides = array<i32>} : memref<8x128xf32, #tpu.memory_space<vmem>>, vector<8x128xf32>,
    return
  }
  func.func @transform_0(%arg0: i32, %arg1: i32) -> (i32, i32) {
    %c0_i32 = arith.constant 0 : i32
    %c0_i32_0 = arith.constant 0 : i32
    return %arg0, %c0_i32 : i32, i32
  }
  func.func @transform_1(%arg0: i32, %arg1: i32) -> (i32, i32) {
    %c0_i32 = arith.constant 0 : i32
    %c0_i32_0 = arith.constant 0 : i32
    return %c0_i32, %arg1 : i32, i32
  }
  func.func @transform_2(%arg0: i32, %arg1: i32) -> (i32, i32) {
    %c0_i32 = arith.constant 0 : i32
    %c0_i32_0 = arith.constant 0 : i32
    return %c0_i32, %arg1 : i32, i32
  }
  func.func @transform_3(%arg0: i32, %arg1: i32) -> (i32, i32) {
    %c0_i32 = arith.constant 0 : i32
    %c0_i32_0 = arith.constant 0 : i32
    %c0_i32_1 = arith.constant 0 : i32
    return %c0_i32, %c0_i32_0 : i32, i32
  }
  func.func @transform_4(%arg0: i32, %arg1: i32) -> (i32, i32) {
    %c0_i32 = arith.constant 0 : i32
    return %arg0, %arg1 : i32, i32
  }
}

module attributes {stable_mosaic.version = 11 : i64} {
  func.func @_sublayer_connection_kernel(%arg0: i32, %arg1: i32, %arg2: memref<8x128xf32, #tpu.memory_space<vmem>>, %arg3: memref<128x128xbf16, #tpu.memory_space<vmem>>, %arg4: memref<1x128xf32, #tpu.memory_space<vmem>>, %arg5: memref<2x128xf32, #tpu.memory_space<vmem>>, %arg6: memref<8x128xf32, #tpu.memory_space<vmem>>, %arg7: memref<8x128xbf16, #tpu.memory_space<vmem>>) attributes {dimension_semantics = [#tpu.dimension_semantics<parallel>, #tpu.dimension_semantics<arbitrary>], iteration_bounds = array<i64: 2, 1>, scalar_prefetch = 0 : i64, scratch_operands = 1 : i64, tpu.core_type = #tpu.core_type<tc>, window_params = [{transform_indices = @transform_0, window_bounds = array<i64: 8, 128>}, {transform_indices = @transform_1, window_bounds = array<i64: 128, 128>}, {transform_indices = @transform_2, window_bounds = array<i64: 1, 128>}, {pipeline_mode = #tpu.pipeline_mode<synchronous>, transform_indices = @transform_3, window_bounds = array<i64: 2, 128>}, {transform_indices = @transform_4, window_bounds = array<i64: 8, 128>}]} {
    %c0_i32 = arith.constant 0 : i32
    %0 = arith.cmpi eq, %arg1, %c0_i32 : i32
    %1 = arith.extui %0 : i1 to i32
    %c0_i32_0 = arith.constant 0 : i32
    %2 = arith.cmpi ne, %1, %c0_i32_0 : i32
    scf.if %2 {
      %c0_9 = arith.constant 0 : index
      %c0_10 = arith.constant 0 : index
      %15 = vector.load %arg2[%c0_9, %c0_10] : memref<8x128xf32, #tpu.memory_space<vmem>>, vector<8x128xf32>
      %cst_11 = arith.constant dense<0.000000e+00> : vector<8xf32>
      %16 = vector.multi_reduction <add>, %15, %cst_11 [1] : vector<8x128xf32> to vector<8xf32>
      %17 = vector.shape_cast %16 : vector<8xf32> to vector<8x1xf32>
      %cst_12 = arith.constant 1.280000e+02 : f32
      %18 = vector.broadcast %cst_12 : f32 to vector<8x1xf32>
      %19 = arith.divf %17, %18 : vector<8x1xf32>
      %20 = vector.broadcast %19 : vector<8x1xf32> to vector<8x128xf32>
      %21 = arith.subf %15, %20 : vector<8x128xf32>
      %22 = arith.mulf %21, %21 : vector<8x128xf32>
      %cst_13 = arith.constant dense<0.000000e+00> : vector<8xf32>
      %23 = vector.multi_reduction <add>, %22, %cst_13 [1] : vector<8x128xf32> to vector<8xf32>
      %24 = vector.shape_cast %23 : vector<8xf32> to vector<8x1xf32>
      %cst_14 = arith.constant 0.00787401571 : f32
      %25 = vector.broadcast %cst_14 : f32 to vector<8x1xf32>
      %26 = arith.mulf %24, %25 : vector<8x1xf32>
      %27 = math.sqrt %26 : vector<8x1xf32>
      %cst_15 = arith.constant 9.99999997E-7 : f32
      %28 = vector.broadcast %cst_15 : f32 to vector<8x1xf32>
      %29 = arith.addf %27, %28 : vector<8x1xf32>
      %30 = tpu.reciprocal %29 {approx = true} : vector<8x1xf32> -> vector<8x1xf32>
      %31 = arith.mulf %29, %30 : vector<8x1xf32>
      %cst_16 = arith.constant 2.000000e+00 : f32
      %32 = vector.broadcast %cst_16 : f32 to vector<8x1xf32>
      %33 = arith.subf %32, %31 : vector<8x1xf32>
      %34 = arith.mulf %30, %33 : vector<8x1xf32>
      %c0_17 = arith.constant 0 : index
      %c0_18 = arith.constant 0 : index
      %35 = vector.load %arg5[%c0_17, %c0_18] : memref<2x128xf32, #tpu.memory_space<vmem>>, vector<2x128xf32>
      %36 = vector.extract_strided_slice %35 {offsets = [0, 0], sizes = [1, 128], strides = [1, 1]} : vector<2x128xf32> to vector<1x128xf32>
      %37 = vector.broadcast %34 : vector<8x1xf32> to vector<8x128xf32>
      %38 = arith.mulf %21, %37 : vector<8x128xf32>
      %39 = vector.broadcast %36 : vector<1x128xf32> to vector<8x128xf32>
      %40 = arith.mulf %39, %38 : vector<8x128xf32>
      %41 = vector.extract_strided_slice %35 {offsets = [1, 0], sizes = [1, 128], strides = [1, 1]} : vector<2x128xf32> to vector<1x128xf32>
      %42 = vector.broadcast %41 : vector<1x128xf32> to vector<8x128xf32>
      %43 = arith.addf %40, %42 : vector<8x128xf32>
      %44 = arith.truncf %43 : vector<8x128xf32> to vector<8x128xbf16>
      %c0_19 = arith.constant 0 : index
      %c0_20 = arith.constant 0 : index
      %45 = vector.load %arg7[%c0_19, %c0_20] : memref<8x128xbf16, #tpu.memory_space<vmem>>, vector<8x128xbf16>
      tpu.vector_store %arg7[%c0_19, %c0_20], %44 {strides = array<i32>} : memref<8x128xbf16, #tpu.memory_space<vmem>>, vector<8x128xbf16>,
    } else {
    }
    %c0 = arith.constant 0 : index
    %c0_1 = arith.constant 0 : index
    %3 = vector.load %arg7[%c0, %c0_1] : memref<8x128xbf16, #tpu.memory_space<vmem>>, vector<8x128xbf16>
    %c0_2 = arith.constant 0 : index
    %c0_3 = arith.constant 0 : index
    %4 = vector.load %arg3[%c0_2, %c0_3] : memref<128x128xbf16, #tpu.memory_space<vmem>>, vector<128x128xbf16>
    %cst = arith.constant dense<0.000000e+00> : vector<8x128xf32>
    %5 = tpu.matmul %3, %4, %cst {dimension_numbers = #tpu.dot_dimension_numbers<[1], [0], [0], [1], [0, 0, 1, 1], [], []>} : vector<8x128xbf16>, vector<128x128xbf16>, vector<8x128xf32> -> vector<8x128xf32>
    %c0_4 = arith.constant 0 : index
    %c0_5 = arith.constant 0 : index
    %6 = vector.load %arg4[%c0_4, %c0_5] : memref<1x128xf32, #tpu.memory_space<vmem>>, vector<1x128xf32>
    %7 = vector.broadcast %6 : vector<1x128xf32> to vector<8x128xf32>
    %8 = arith.addf %5, %7 : vector<8x128xf32>
    %c128_i32 = arith.constant 128 : i32
    %9 = arith.muli %arg1, %c128_i32 : i32
    %10 = tpu.assume_multiple %9, 128 : i32
    %c0_6 = arith.constant 0 : index
    %11 = arith.index_cast %10 : i32 to index
    %12 = vector.load %arg2[%c0_6, %11] : memref<8x128xf32, #tpu.memory_space<vmem>>, vector<8x128xf32>
    %13 = arith.addf %12, %8 : vector<8x128xf32>
    %c0_7 = arith.constant 0 : index
    %c0_8 = arith.constant 0 : index
    %14 = vector.load %arg6[%c0_7, %c0_8] : memref<8x128xf32, #tpu.memory_space<vmem>>, vector<8x128xf32>
    tpu.vector_store %arg6[%c0_7, %c0_8], %13 {strides = array<i32>} : memref<8x128xf32, #tpu.memory_space<vmem>>, vector<8x128xf32>,
    return
  }
  func.func @transform_0(%arg0: i32, %arg1: i32) -> (i32, i32) {
    %c0_i32 = arith.constant 0 : i32
    %c0_i32_0 = arith.constant 0 : i32
    return %arg0, %c0_i32 : i32, i32
  }
  func.func @transform_1(%arg0: i32, %arg1: i32) -> (i32, i32) {
    %c0_i32 = arith.constant 0 : i32
    %c0_i32_0 = arith.constant 0 : i32
    return %c0_i32, %arg1 : i32, i32
  }
  func.func @transform_2(%arg0: i32, %arg1: i32) -> (i32, i32) {
    %c0_i32 = arith.constant 0 : i32
    %c0_i32_0 = arith.constant 0 : i32
    return %c0_i32, %arg1 : i32, i32
  }
  func.func @transform_3(%arg0: i32, %arg1: i32) -> (i32, i32) {
    %c0_i32 = arith.constant 0 : i32
    %c0_i32_0 = arith.constant 0 : i32
    %c0_i32_1 = arith.constant 0 : i32
    return %c0_i32, %c0_i32_0 : i32, i32
  }
  func.func @transform_4(%arg0: i32, %arg1: i32) -> (i32, i32) {
    %c0_i32 = arith.constant 0 : i32
    return %arg0, %arg1 : i32, i32
  }
}

</mosaic_0001>

<bundles_post_ra>
// kernel: tpu_custom_call.1
= control target key start
LH: loop header
LB: loop body
LE: loop exit
PB: predicated region body
PF: predicated region fallthrough
CT: control target
= control target key end

     0   :  { %9 = vsyncpa [#allocation4], 0  ;;  %s1092_s0 = inlined_call_operand.hbm [shape: f32[16,128], index: 0, kind: input, shape index: {}]   ;;  %s1093_s1 = inlined_call_operand.hbm [shape: bf16[128,128], index: 1, kind: input, shape index: {}]   ;;  %s1094_s2 = inlined_call_operand.vmem [shape: f32[1,128], index: 2, kind: input, shape index: {}]   ;;  %s1095_s3 = inlined_call_operand.vmem [shape: f32[2,128], index: 3, kind: input, shape index: {}]   ;;  %s1096_s4 = inlined_call_operand.hbm [shape: f32[16,128], index: 4, kind: output, shape index: {}]  }
   0x1   :  { %11 = vsyncpa [#allocation4 + $0x1], 0 }
   0x2   :  { %12 = vsyncpa [#allocation7], 0 }
   0x3   :  { %13 = vsyncpa [#allocation5], 0 }
   0x4   :  { %15 = vsyncpa [#allocation5 + $0x1], 0  ;;  %s863_s15 = smov 0   ;;  %s865_s16 = smov 0  }
   0x5   :  { %s867_s17 = smov 0   ;;  %s869_s18 = smov 0  }
   0x6   :  { %s871_s19 = smov 0   ;;  %s873_s20 = smov 0  }
   0x7 LB: > { %s542_s21 = sadd.s32 4294967295, %s829_s20   ;;  %s543_s22 = sadd.s32 4294967294, %s829_s20   ;;  %s829_s20 = sphi %s873_s20, %s21_s20   ;;  %s825_s19 = sphi %s871_s19, %s1120_s19   ;;  %s821_s18 = sphi %s869_s18, %s1119_s18   ;;  %s817_s17 = sphi %s867_s17, %s1118_s17   ;;  %s813_s16 = sphi %s865_s16, %s1117_s16   ;;  %s809_s15 = sphi %s863_s15, %s1116_s15  }
   0x8   : > { %p53_p0 = scmp.ne.s32.totalorder %s813_s16, %s809_s15  ;;  %p897_p1 = scmp.eq.s32.totalorder %s542_s21, 0 }
   0x9   : > { %p901_p2 = scmp.eq.s32.totalorder %s542_s21, 1  ;;  %p158_p3 = scmp.eq.s32.totalorder %s543_s22, 1 }
   0xa   : > { %s1101_s23 = scalar_select %p897_p1, 1, 0 }
   0xb   : > { %s1102_s24 = scalar_select %p901_p2, 1, 0 }
   0xc   : > { %p907_p4 = por %p897_p1, %p53_p0  ;;  %p544_p5 = scmp.ge.s32.totalorder %s829_s20, 1 }
   0xd   : > { %p912_p6 = por %p158_p3, %p53_p0  ;;  %p165_p7 = scmp.lt.s32.totalorder %s829_s20, 3 }
   0xe   : > { %s1103_s25 = scalar_select %p907_p4, 1, 0 }
   0xf   : > { %s1104_s26 = scalar_select %p912_p6, 1, 0 }
  0x10   : > { %p917_p8 = pnand %p544_p5, %p165_p7  ;;  %s831_s28 = smov [#allocation6]  }
  0x11   : > { %s179_s29 = sshll.u32 %s831_s28, 4  ;;  %s33_s5 = sadd.s32 1, %s825_s19  ;;  %s180_s29 = int_to_ptr.vmem [resolvable:$true] %s179_s29 }
  0x12   : > { %s1105_s27 = scalar_select %p917_p8, 1, 0 }
  0x13   : > { %p604_p9 = pneg %p917_p8  ;;  %s685_s8 = scalar_lea.hbm %s1093_s1, 1024 }
  0x14   : > { %p686_p12 = scmp.ne.s32.totalorder %s1093_s1, %s685_s8  ;;  %p692_p5 = scmp.lt.u32.totalorder %s685_s8, %s1093_s1 }
  0x15   : > { %p926_p11 = pnand %p604_p9, %p897_p1 }
  0x17   : > { %p687_p13 = pneg %p926_p11 }
  0x19   : > { %p688_p0 = pnand %p687_p13, %p686_p12 }
  0x1b   : > { %p689_p3 = pneg %p688_p0 }
  0x1d   : > { %p694_p7 = pnand %p692_p5, %p689_p3 }
  0x1f   : > { %697 = shalt.err (!%p694_p7)
}
  0x20   : > { %s698_s13 = scalar_lea.vmem %s180_s29, 1024  ;;  %p706_p1 = scmp.lt.s32.totalorder %s180_s29, %s180_s29 }
  0x21   : > { %p699_p9 = scmp.ne.s32.totalorder %s180_s29, %s698_s13  ;;  %p707_p4 = scmp.lt.s32.totalorder %s698_s13, %s698_s13 }
  0x23   : > { %p701_p10 = pnand %p699_p9, %p687_p13  ;;  %p708_p8 = por %p707_p4, %p706_p1 }
  0x25   : > { %p702_p6 = pneg %p701_p10 }
  0x27   : > { %p709_p2 = pnand %p708_p8, %p702_p6 }
  0x29   : > { %712 = shalt.err (!%p709_p2)
}
  0x2a   : > { %s832_s14 = smov 64   ;;  %s833_s21 = smov 4  }
  0x2b   : > { %607 = dma.hbm_to_vmem [thread:$0]  (!%p926_p11), %s1093_s1, 1024, %s180_s29, [#allocation7], %s832_s14, %s832_s14, %s833_s21  }
  0x2c   : > { %p35_p1 = scmp.ge.s32.totalorder %s33_s5, 2  ;;  %s40_s6 = sadd.s32 1, %s817_s17 }
  0x2d   : > { %p47_p2 = scmp.ne.s32.totalorder %s817_s17, %s813_s16  ;;  %p48_p4 = scmp.eq.s32.totalorder %s829_s20, 0 }
  0x2e   : > { %s1122_s5 = smov (%p35_p1, %s33_s5), 0  ;;  %p1108_p8 = scmp.ne.s32.totalorder %s1102_s24, 0 }
  0x2f   : > { %p953_p6 = por %p48_p4, %p47_p2  ;;  %s37_s30 = ssub.s32 %s825_s19, %s1122_s5 }
  0x30   : > { %p959_p10 = por %p1108_p8, %p47_p2  ;;  %p617_p12 = scmp.lt.s32.totalorder %s829_s20, 2 }
  0x31   : > { %p38_p11 = scmp.eq.s32.totalorder %s37_s30, 0  ;;  %s202_s29 = sand.u32 1, %s817_s17  }
  0x32   : > { %s548_s9 = sshll.u32 %s202_s29, 3  ;;  %s549_s11 = sshll.u32 %s825_s19, 7 }
  0x33   : > { %s968_s10 = scalar_select %p38_p11, %s817_s17, %s40_s6  }
  0x34   : > { %s974_s14 = scalar_lea.hbm %s1092_s0, %s549_s11  ;;  %s206_s24 = scalar_lea.vmem [#allocation3], %s548_s9 }
  0x35   : > { %s213_s21 = sshll.u32 %s206_s24, 4  ;;  %p980_p13 = pnand %p617_p12, %p953_p6  ;;  %s976_s21 = int_to_ptr.vmem [resolvable:$true] %s213_s21 }
  0x36   : > { %s203_s28 = scalar_lea.sflag [#allocation4], %s202_s29  ;;  %s713_s6 = scalar_lea.hbm %s974_s14, 128 }
  0x37   : > { %p714_p0 = scmp.ne.s32.totalorder %s974_s14, %s713_s6  ;;  %p715_p3 = pneg %p980_p13 }
  0x38   : > { %s718_s11 = scalar_lea.hbm %s1092_s0, 256  ;;  %p719_p9 = scmp.lt.u32.totalorder %s974_s14, %s1092_s0 }
  0x39   : > { %p716_p5 = pnand %p715_p3, %p714_p0  ;;  %p720_p1 = scmp.lt.u32.totalorder %s718_s11, %s713_s6 }
  0x3a   : > { %p722_p4 = scmp.lt.u32.totalorder %s713_s6, %s974_s14 }
  0x3b   : > { %p717_p7 = pneg %p716_p5  ;;  %p721_p2 = por %p720_p1, %p719_p9 }
  0x3d   : > { %p723_p6 = por %p722_p4, %p721_p2 }
  0x3f   : > { %p724_p8 = pnand %p723_p6, %p717_p7 }
  0x41   : > { %727 = shalt.err (!%p724_p8)
}
  0x42   : > { %s728_s29 = scalar_lea.vmem %s976_s21, 128  ;;  %s834_s13 = smov [#allocation3]  }
  0x43   : > { %p729_p12 = scmp.ne.s32.totalorder %s976_s21, %s728_s29  ;;  %s733_s24 = sshll.u32 %s834_s13, 4  ;;  %s734_s24 = int_to_ptr.vmem [resolvable:$false] %s733_s24 }
  0x44   : > { %s735_s30 = scalar_lea.vmem %s734_s24, 256  ;;  %p736_p5 = scmp.lt.s32.totalorder %s976_s21, %s734_s24 }
  0x45   : > { %p731_p11 = pnand %p729_p12, %p715_p3  ;;  %p737_p9 = scmp.lt.s32.totalorder %s735_s30, %s728_s29 }
  0x47   : > { %p732_p0 = pneg %p731_p11  ;;  %p738_p1 = por %p737_p9, %p736_p5 }
  0x49   : > { %p739_p2 = pnand %p738_p1, %p732_p0 }
  0x4b   : > { %742 = shalt.err (!%p739_p2)
}
  0x4c   : > { %611 = dma.hbm_to_vmem [thread:$0]  (!%p980_p13), %s974_s14, 128, %s976_s21, %s203_s28  }
  0x4d   : > { %p1111_p7 = scmp.ne.s32.totalorder %s1105_s27, 0 }
  0x4e   : > { %s1012_s6 = sand.u32 (!%p1111_p7), 1, %s813_s16   ;;  %p1112_p3 = scmp.ne.s32.totalorder (!%p1111_p7), %s1103_s25, 0 }
  0x4f   : > { %222 = sbr.rel (%p1111_p7) target bundleno = 663 (0x297), region = 36  ;;  %s551_s9 = sshll.u32 (!%p1111_p7), %s1012_s6, 3 }
  0x50   : > { %s225_s11 = scalar_lea.sflag (!%p1111_p7), [#allocation4], %s1012_s6  ;;  %s228_s7 = scalar_lea.vmem (!%p1111_p7), [#allocation3], %s551_s9 }
  0x56   : > { %796 = dma.done.wait (%p1112_p3), %s225_s11, 128  }
  0x57   : > { %798 = vsyncadd (%p1112_p3), %s225_s11, 4294967168  ;;  %p1113_p13 = scmp.ne.s32.totalorder %s1101_s23, 0 }
  0x59   : > { %800 = dma.done.wait (%p1113_p13), [#allocation7], 1024  }
  0x5a   : > { %802 = vsyncadd (%p1113_p13), [#allocation7], 4294966272  ;;  %v1026_v0 = vld [vmem:[%s228_s7] sm:$0xff]  ;;  %v673_v5 = vld [vmem:[#allocation6] sm:$0xff]   ;;  %v835_v6 = vmov 0.0   ;;  %vm836_vm0 = vmmov 0   ;;  %v292_v22 = vlaneseq }
  0x5b   : > { %269 = vadd.xlane.f32.xlu0 %v1026_v0  ;;  %576 = vmatprep.subr.bf16.mxu0 %v835_v6  ;;  %v674_v7 = vld [vmem:[#allocation6 + $0x8] sm:$0xff]   ;;  %v675_v8 = vld [vmem:[#allocation6 + $0x10] sm:$0xff]   ;;  %v676_v9 = vld [vmem:[#allocation6 + $0x18] sm:$0xff]   ;;  %s564_s21 = sshll.u32 %s821_s18, 7  ;;  %s259_s22 = scalar_lea.vmem [#allocation8], %s551_s9 }
  0x5c   : > { %577 = vmatpush3.bf16.msra.mxu0 %v673_v5  ;;  %v677_v10 = vld [vmem:[#allocation6 + $0x20] sm:$0xff]   ;;  %v678_v11 = vld [vmem:[#allocation6 + $0x28] sm:$0xff]   ;;  %v679_v12 = vld [vmem:[#allocation6 + $0x30] sm:$0xff]   ;;  %592 = vmatprep.mubr.msk.bf16.mxu0 %vm836_vm0, %v835_v6  ;;  %v293_v23 = vshrl.u32 %v292_v22, 7  ;;  %s438_s28 = sshll.u32 %s259_s22, 4  ;;  %s1043_s13 = scalar_lea.hbm %s1096_s4, %s564_s21  ;;  %s1045_s28 = int_to_ptr.vmem [resolvable:$true] %s438_s28 }
  0x5d   : > { %578 = vmatprep.subr.bf16.mxu0 %v835_v6  ;;  %v680_v13 = vld [vmem:[#allocation6 + $0x38] sm:$0xff]   ;;  %v290_v27 = vld [vmem:[%s1095_s3] sm:$0x3]  ;;  %s424_s18 = scalar_lea.sflag [#allocation5], %s1012_s6  ;;  %s743_s24 = scalar_lea.vmem %s1045_s28, 128 }
  0x5e   : > { %v294_v25 = vsub.s32 0, %v293_v23  ;;  %v299_v28 = vsub.s32 1, %v293_v23  ;;  %v554_v38 = vld [vmem:[%s1094_s2] ss:$0 sm:$0xff]  ;;  %p744_p4 = scmp.ne.s32.totalorder %s1045_s28, %s743_s24  ;;  %s837_s30 = smov [#allocation8]  }
  0x5f   : > { %s747_s9 = sshll.u32 %s837_s30, 4  ;;  %s748_s9 = int_to_ptr.vmem [resolvable:$false] %s747_s9 }
  0x60   : > { %579 = vmatpush3.bf16.msra.mxu0 %v674_v7  ;;  %v295_v30 = vrot.slane %v290_v27, %v294_v25  ;;  %v300_v32 = vrot.slane %v290_v27, %v299_v28  ;;  %p745_p6 = pnand %p744_p4, %p959_p10  ;;  %s749_s11 = scalar_lea.vmem %s748_s9, 256 }
  0x61   : > { %580 = vmatprep.subr.bf16.mxu0 %v835_v6  ;;  %p750_p12 = scmp.lt.s32.totalorder %s1045_s28, %s748_s9  ;;  %p751_p11 = scmp.lt.s32.totalorder %s749_s11, %s743_s24 }
  0x62   : > { %p746_p8 = pneg %p745_p6 }
  0x63   : > { %p752_p0 = por %p751_p11, %p750_p12 }
  0x64   : > { %581 = vmatpush3.bf16.msra.mxu0 %v675_v8 }
  0x65   : > { %582 = vmatprep.subr.bf16.mxu0 %v835_v6  ;;  %p753_p5 = pnand %p752_p0, %p746_p8 }
  0x68   : > { %583 = vmatpush3.bf16.msra.mxu0 %v676_v9 }
  0x69   : > { %584 = vmatprep.subr.bf16.mxu0 %v835_v6 }
  0x6c   : > { %585 = vmatpush3.bf16.msra.mxu0 %v677_v10 }
  0x6d   : > { %586 = vmatprep.subr.bf16.mxu0 %v835_v6 }
  0x70   : > { %587 = vmatpush3.bf16.msra.mxu0 %v678_v11 }
  0x71   : > { %588 = vmatprep.subr.bf16.mxu0 %v835_v6 }
  0x74   : > { %589 = vmatpush3.bf16.msra.mxu0 %v679_v12 }
  0x75   : > { %590 = vmatprep.subr.bf16.mxu0 %v835_v6 }
  0x78   : > { %591 = vmatpush3.bf16.msra.mxu0 %v680_v13 }
  0xe8   : > { %v270_v1 = vpop.xlane.xlu0 %269 }
  0xe9   : > { %v272_v2 = vmul.f32 0.0078125, %v270_v1 }
  0xeb   : > { %v273_v3 = vsub.f32 %v1026_v0, %v272_v2 }
  0xed   : > { %v274_v4 = vmul.f32 %v273_v3, %v273_v3 }
  0xef   : > { %275 = vadd.xlane.f32.xlu0 %v274_v4 }
 0x17c   : > { %v276_v14 = vpop.xlane.xlu0 %275 }
 0x17d   : > { %v277_v15 = vmul.f32 0.007874016, %v276_v14 }
 0x17f   : > { %681 = vrsqrt.f32 %v277_v15  ;;  %vm280_vm1 = vcmp.eq.f32.partialorder %v277_v15, inf  ;;  %v283_v18 = vand.u32 2147483648, %v277_v15  ;;  %vm282_vm2 = vcmp.eq.f32.partialorder %v277_v15, 0.0 }
 0x189   : > { %v682_v16 = vpop.eup %681 }
 0x18a   : > { %v279_v17 = vmul.f32 %v682_v16, %v277_v15 }
 0x18c   : > { %v281_v19 = vsel %vm280_vm1, %v277_v15, %v279_v17 }
 0x18d   : > { %v284_v20 = vsel %vm282_vm2, %v283_v18, %v281_v19 }
 0x18e   : > { %v285_v21 = vadd.f32 1e-06, %v284_v20 }
 0x190   : > { %683 = vrcp.f32 %v285_v21 }
 0x19a   : > { %v684_v24 = vpop.eup %683 }
 0x19b   : > { %v287_v26 = vmul.f32 %v684_v24, %v285_v21 }
 0x19d   : > { %v288_v29 = vsub.f32 2.0, %v287_v26 }
 0x19f   : > { %v289_v31 = vmul.f32 %v684_v24, %v288_v29 }
 0x1a1   : > { %v291_v33 = vmul.f32 %v289_v31, %v273_v3 }
 0x1a3   : > { %v296_v34 = vmul.f32 %v295_v30, %v291_v33 }
 0x1a5   : > { %v301_v35 = vadd.f32 %v300_v32, %v296_v34 }
 0x1a7   : > { %v302_v36 = vpack.c.bf16 %v301_v35, %v301_v35 }
 0x1a9   : > { %303 = vst [vmem:[#allocation2] sm:$0xf] %v302_v36 }
 0x1b0   : > { %v304_v37 = vld [vmem:[#allocation2] sm:$0xf] }
 0x1b1   : > { %593 = vmatmul.mubr.bf16.vlgmr.msra.gmra.mrb[0].mxu0 %v304_v37 }
 0x284   : > { %v410_v39 = vpop.f32.mrb[0].mxu0 }
 0x285   : > { %v411_v40 = vadd.f32 %v554_v38, %v410_v39  ;;  %v594_v41 = vpop.f32.mrb[1].mxu0 }
 0x286   : > { %v413_v42 = vpop.f32.mrb[2].mxu0 }
 0x287   : > { %v421_v43 = vadd.f32 %v411_v40, %v1026_v0  ;;  %v595_v44 = vpop.f32.mrb[3].mxu0 }
 0x289   : > { %422 = vst [vmem:[%s259_s22] sm:$0xff] %v421_v43 }
 0x28a   : > { %756 = shalt.err (!%p753_p5)
}
 0x28b   : > { %s757_s6 = scalar_lea.hbm %s1043_s13, 128  ;;  %s761_s25 = scalar_lea.hbm %s1096_s4, 256 }
 0x28c   : > { %p758_p9 = scmp.ne.s32.totalorder %s1043_s13, %s757_s6  ;;  %p762_p7 = scmp.lt.u32.totalorder %s1043_s13, %s1096_s4 }
 0x28d   : > { %p763_p3 = scmp.lt.u32.totalorder %s761_s25, %s757_s6  ;;  %p765_p4 = scmp.lt.u32.totalorder %s757_s6, %s1043_s13 }
 0x28e   : > { %p759_p1 = pnand %p758_p9, %p959_p10 }
 0x28f   : > { %p764_p13 = por %p763_p3, %p762_p7 }
 0x290   : > { %p760_p2 = pneg %p759_p1 }
 0x291   : > { %p766_p6 = por %p765_p4, %p764_p13 }
 0x293   : > { %p767_p8 = pnand %p766_p6, %p760_p2 }
 0x295   : > { %770 = shalt.err (!%p767_p8)
}
 0x296   : > { %602 = dma.vmem_to_hbm [thread:$0]  (%p959_p10), %s1045_s28, 128, %s1043_s13, %s424_s18  }
 0x297 PF: > { %s450_s21 = sand.u32 1, %s809_s15   ;;  %p1114_p12 = scmp.ne.s32.totalorder %s1104_s26, 0 }
 0x298   : > { %p1115_p11 = scmp.ge.s32.totalorder %s829_s20, 2  ;;  %s451_s22 = scalar_lea.sflag [#allocation5], %s450_s21 }
 0x29a   : > { %p613_p0 = pnand %p1115_p11, %p1114_p12 }
 0x29c   : > { %804 = dma.done.wait (!%p613_p0), %s451_s22, 128  }
 0x29d   : > { %806 = vsyncadd (!%p613_p0), %s451_s22, 4294967168  ;;  %s21_s20 = sadd.s32 1, %s829_s20   ;;  %s1116_s15 = smov %s813_s16 }
 0x29e   : > { %p18_p5 = scmp.ge.s32.totalorder %s21_s20, 4   ;;  %s1117_s16 = smov %s817_s17 }
 0x29f   : > { %s1118_s17 = smov %s968_s10  ;;  %s1119_s18 = smov %s825_s19 }
 0x2a0   : > { %s1120_s19 = smov %s1122_s5  ;;  %20 = sbr.rel (!%p18_p5) target bundleno = 7 (0x7), region = 94 }
 0x2a7   :  { %456 = vsyncpa [#allocation4], 1 }
 0x2a8   :  { %458 = vsyncpa [#allocation4 + $0x1], 1 }
 0x2a9   :  { %459 = vsyncpa [#allocation7], 1 }
 0x2aa   :  { %460 = vsyncpa [#allocation5], 1 }
 0x2ab   :  { %462 = vsyncpa [#allocation5 + $0x1], 1 }

// kernel: tpu_custom_call.1
= control target key start
LH: loop header
LB: loop body
LE: loop exit
PB: predicated region body
PF: predicated region fallthrough
CT: control target
= control target key end

     0   :  { %9 = vsyncpa [#allocation4], 0  ;;  %s1092_s0 = inlined_call_operand.hbm [shape: f32[16,128], index: 0, kind: input, shape index: {}]   ;;  %s1093_s1 = inlined_call_operand.hbm [shape: bf16[128,128], index: 1, kind: input, shape index: {}]   ;;  %s1094_s2 = inlined_call_operand.vmem [shape: f32[1,128], index: 2, kind: input, shape index: {}]   ;;  %s1095_s3 = inlined_call_operand.vmem [shape: f32[2,128], index: 3, kind: input, shape index: {}]   ;;  %s1096_s4 = inlined_call_operand.hbm [shape: f32[16,128], index: 4, kind: output, shape index: {}]  }
   0x1   :  { %11 = vsyncpa [#allocation4 + $0x1], 0 }
   0x2   :  { %12 = vsyncpa [#allocation7], 0 }
   0x3   :  { %13 = vsyncpa [#allocation5], 0 }
   0x4   :  { %15 = vsyncpa [#allocation5 + $0x1], 0  ;;  %s863_s15 = smov 0   ;;  %s865_s16 = smov 0  }
   0x5   :  { %s867_s17 = smov 0   ;;  %s869_s18 = smov 0  }
   0x6   :  { %s871_s19 = smov 0   ;;  %s873_s20 = smov 0  }
   0x7 LB: > { %s542_s21 = sadd.s32 4294967295, %s829_s20   ;;  %s543_s22 = sadd.s32 4294967294, %s829_s20   ;;  %s829_s20 = sphi %s873_s20, %s21_s20   ;;  %s825_s19 = sphi %s871_s19, %s1120_s19   ;;  %s821_s18 = sphi %s869_s18, %s1119_s18   ;;  %s817_s17 = sphi %s867_s17, %s1118_s17   ;;  %s813_s16 = sphi %s865_s16, %s1117_s16   ;;  %s809_s15 = sphi %s863_s15, %s1116_s15  }
   0x8   : > { %p53_p0 = scmp.ne.s32.totalorder %s813_s16, %s809_s15  ;;  %p897_p1 = scmp.eq.s32.totalorder %s542_s21, 0 }
   0x9   : > { %p901_p2 = scmp.eq.s32.totalorder %s542_s21, 1  ;;  %p158_p3 = scmp.eq.s32.totalorder %s543_s22, 1 }
   0xa   : > { %s1101_s23 = scalar_select %p897_p1, 1, 0 }
   0xb   : > { %s1102_s24 = scalar_select %p901_p2, 1, 0 }
   0xc   : > { %p907_p4 = por %p897_p1, %p53_p0  ;;  %p544_p5 = scmp.ge.s32.totalorder %s829_s20, 1 }
   0xd   : > { %p912_p6 = por %p158_p3, %p53_p0  ;;  %p165_p7 = scmp.lt.s32.totalorder %s829_s20, 3 }
   0xe   : > { %s1103_s25 = scalar_select %p907_p4, 1, 0 }
   0xf   : > { %s1104_s26 = scalar_select %p912_p6, 1, 0 }
  0x10   : > { %p917_p8 = pnand %p544_p5, %p165_p7  ;;  %s831_s28 = smov [#allocation6]  }
  0x11   : > { %s179_s29 = sshll.u32 %s831_s28, 4  ;;  %s33_s5 = sadd.s32 1, %s825_s19  ;;  %s180_s29 = int_to_ptr.vmem [resolvable:$true] %s179_s29 }
  0x12   : > { %s1105_s27 = scalar_select %p917_p8, 1, 0 }
  0x13   : > { %p604_p9 = pneg %p917_p8  ;;  %s685_s8 = scalar_lea.hbm %s1093_s1, 1024 }
  0x14   : > { %p686_p12 = scmp.ne.s32.totalorder %s1093_s1, %s685_s8  ;;  %p692_p5 = scmp.lt.u32.totalorder %s685_s8, %s1093_s1 }
  0x15   : > { %p926_p11 = pnand %p604_p9, %p897_p1 }
  0x17   : > { %p687_p13 = pneg %p926_p11 }
  0x19   : > { %p688_p0 = pnand %p687_p13, %p686_p12 }
  0x1b   : > { %p689_p3 = pneg %p688_p0 }
  0x1d   : > { %p694_p7 = pnand %p692_p5, %p689_p3 }
  0x1f   : > { %697 = shalt.err (!%p694_p7)
}
  0x20   : > { %s698_s13 = scalar_lea.vmem %s180_s29, 1024  ;;  %p706_p1 = scmp.lt.s32.totalorder %s180_s29, %s180_s29 }
  0x21   : > { %p699_p9 = scmp.ne.s32.totalorder %s180_s29, %s698_s13  ;;  %p707_p4 = scmp.lt.s32.totalorder %s698_s13, %s698_s13 }
  0x23   : > { %p701_p10 = pnand %p699_p9, %p687_p13  ;;  %p708_p8 = por %p707_p4, %p706_p1 }
  0x25   : > { %p702_p6 = pneg %p701_p10 }
  0x27   : > { %p709_p2 = pnand %p708_p8, %p702_p6 }
  0x29   : > { %712 = shalt.err (!%p709_p2)
}
  0x2a   : > { %s832_s14 = smov 64   ;;  %s833_s21 = smov 4  }
  0x2b   : > { %607 = dma.hbm_to_vmem [thread:$0]  (!%p926_p11), %s1093_s1, 1024, %s180_s29, [#allocation7], %s832_s14, %s832_s14, %s833_s21  }
  0x2c   : > { %p35_p1 = scmp.ge.s32.totalorder %s33_s5, 2  ;;  %s40_s6 = sadd.s32 1, %s817_s17 }
  0x2d   : > { %p47_p2 = scmp.ne.s32.totalorder %s817_s17, %s813_s16  ;;  %p48_p4 = scmp.eq.s32.totalorder %s829_s20, 0 }
  0x2e   : > { %s1122_s5 = smov (%p35_p1, %s33_s5), 0  ;;  %p1108_p8 = scmp.ne.s32.totalorder %s1102_s24, 0 }
  0x2f   : > { %p953_p6 = por %p48_p4, %p47_p2  ;;  %s37_s30 = ssub.s32 %s825_s19, %s1122_s5 }
  0x30   : > { %p959_p10 = por %p1108_p8, %p47_p2  ;;  %p617_p12 = scmp.lt.s32.totalorder %s829_s20, 2 }
  0x31   : > { %p38_p11 = scmp.eq.s32.totalorder %s37_s30, 0  ;;  %s202_s29 = sand.u32 1, %s817_s17  }
  0x32   : > { %s548_s9 = sshll.u32 %s202_s29, 3  ;;  %s549_s11 = sshll.u32 %s825_s19, 7 }
  0x33   : > { %s968_s10 = scalar_select %p38_p11, %s817_s17, %s40_s6  }
  0x34   : > { %s974_s14 = scalar_lea.hbm %s1092_s0, %s549_s11  ;;  %s206_s24 = scalar_lea.vmem [#allocation3], %s548_s9 }
  0x35   : > { %s213_s21 = sshll.u32 %s206_s24, 4  ;;  %p980_p13 = pnand %p617_p12, %p953_p6  ;;  %s976_s21 = int_to_ptr.vmem [resolvable:$true] %s213_s21 }
  0x36   : > { %s203_s28 = scalar_lea.sflag [#allocation4], %s202_s29  ;;  %s713_s6 = scalar_lea.hbm %s974_s14, 128 }
  0x37   : > { %p714_p0 = scmp.ne.s32.totalorder %s974_s14, %s713_s6  ;;  %p715_p3 = pneg %p980_p13 }
  0x38   : > { %s718_s11 = scalar_lea.hbm %s1092_s0, 256  ;;  %p719_p9 = scmp.lt.u32.totalorder %s974_s14, %s1092_s0 }
  0x39   : > { %p716_p5 = pnand %p715_p3, %p714_p0  ;;  %p720_p1 = scmp.lt.u32.totalorder %s718_s11, %s713_s6 }
  0x3a   : > { %p722_p4 = scmp.lt.u32.totalorder %s713_s6, %s974_s14 }
  0x3b   : > { %p717_p7 = pneg %p716_p5  ;;  %p721_p2 = por %p720_p1, %p719_p9 }
  0x3d   : > { %p723_p6 = por %p722_p4, %p721_p2 }
  0x3f   : > { %p724_p8 = pnand %p723_p6, %p717_p7 }
  0x41   : > { %727 = shalt.err (!%p724_p8)
}
  0x42   : > { %s728_s29 = scalar_lea.vmem %s976_s21, 128  ;;  %s834_s13 = smov [#allocation3]  }
  0x43   : > { %p729_p12 = scmp.ne.s32.totalorder %s976_s21, %s728_s29  ;;  %s733_s24 = sshll.u32 %s834_s13, 4  ;;  %s734_s24 = int_to_ptr.vmem [resolvable:$false] %s733_s24 }
  0x44   : > { %s735_s30 = scalar_lea.vmem %s734_s24, 256  ;;  %p736_p5 = scmp.lt.s32.totalorder %s976_s21, %s734_s24 }
  0x45   : > { %p731_p11 = pnand %p729_p12, %p715_p3  ;;  %p737_p9 = scmp.lt.s32.totalorder %s735_s30, %s728_s29 }
  0x47   : > { %p732_p0 = pneg %p731_p11  ;;  %p738_p1 = por %p737_p9, %p736_p5 }
  0x49   : > { %p739_p2 = pnand %p738_p1, %p732_p0 }
  0x4b   : > { %742 = shalt.err (!%p739_p2)
}
  0x4c   : > { %611 = dma.hbm_to_vmem [thread:$0]  (!%p980_p13), %s974_s14, 128, %s976_s21, %s203_s28  }
  0x4d   : > { %p1111_p7 = scmp.ne.s32.totalorder %s1105_s27, 0 }
  0x4e   : > { %s1012_s6 = sand.u32 (!%p1111_p7), 1, %s813_s16   ;;  %p1112_p3 = scmp.ne.s32.totalorder (!%p1111_p7), %s1103_s25, 0 }
  0x4f   : > { %222 = sbr.rel (%p1111_p7) target bundleno = 663 (0x297), region = 36  ;;  %s551_s9 = sshll.u32 (!%p1111_p7), %s1012_s6, 3 }
  0x50   : > { %s225_s11 = scalar_lea.sflag (!%p1111_p7), [#allocation4], %s1012_s6  ;;  %s228_s7 = scalar_lea.vmem (!%p1111_p7), [#allocation3], %s551_s9 }
  0x56   : > { %796 = dma.done.wait (%p1112_p3), %s225_s11, 128  }
  0x57   : > { %798 = vsyncadd (%p1112_p3), %s225_s11, 4294967168  ;;  %p1113_p13 = scmp.ne.s32.totalorder %s1101_s23, 0 }
  0x59   : > { %800 = dma.done.wait (%p1113_p13), [#allocation7], 1024  }
  0x5a   : > { %802 = vsyncadd (%p1113_p13), [#allocation7], 4294966272  ;;  %v1026_v0 = vld [vmem:[%s228_s7] sm:$0xff]  ;;  %v673_v5 = vld [vmem:[#allocation6] sm:$0xff]   ;;  %v835_v6 = vmov 0.0   ;;  %vm836_vm0 = vmmov 0   ;;  %v292_v22 = vlaneseq }
  0x5b   : > { %269 = vadd.xlane.f32.xlu0 %v1026_v0  ;;  %576 = vmatprep.subr.bf16.mxu0 %v835_v6  ;;  %v674_v7 = vld [vmem:[#allocation6 + $0x8] sm:$0xff]   ;;  %v675_v8 = vld [vmem:[#allocation6 + $0x10] sm:$0xff]   ;;  %v676_v9 = vld [vmem:[#allocation6 + $0x18] sm:$0xff]   ;;  %s564_s21 = sshll.u32 %s821_s18, 7  ;;  %s259_s22 = scalar_lea.vmem [#allocation8], %s551_s9 }
  0x5c   : > { %577 = vmatpush3.bf16.msra.mxu0 %v673_v5  ;;  %v677_v10 = vld [vmem:[#allocation6 + $0x20] sm:$0xff]   ;;  %v678_v11 = vld [vmem:[#allocation6 + $0x28] sm:$0xff]   ;;  %v679_v12 = vld [vmem:[#allocation6 + $0x30] sm:$0xff]   ;;  %592 = vmatprep.mubr.msk.bf16.mxu0 %vm836_vm0, %v835_v6  ;;  %v293_v23 = vshrl.u32 %v292_v22, 7  ;;  %s438_s28 = sshll.u32 %s259_s22, 4  ;;  %s1043_s13 = scalar_lea.hbm %s1096_s4, %s564_s21  ;;  %s1045_s28 = int_to_ptr.vmem [resolvable:$true] %s438_s28 }
  0x5d   : > { %578 = vmatprep.subr.bf16.mxu0 %v835_v6  ;;  %v680_v13 = vld [vmem:[#allocation6 + $0x38] sm:$0xff]   ;;  %v290_v27 = vld [vmem:[%s1095_s3] sm:$0x3]  ;;  %s424_s18 = scalar_lea.sflag [#allocation5], %s1012_s6  ;;  %s743_s24 = scalar_lea.vmem %s1045_s28, 128 }
  0x5e   : > { %v294_v25 = vsub.s32 0, %v293_v23  ;;  %v299_v28 = vsub.s32 1, %v293_v23  ;;  %v554_v38 = vld [vmem:[%s1094_s2] ss:$0 sm:$0xff]  ;;  %p744_p4 = scmp.ne.s32.totalorder %s1045_s28, %s743_s24  ;;  %s837_s30 = smov [#allocation8]  }
  0x5f   : > { %s747_s9 = sshll.u32 %s837_s30, 4  ;;  %s748_s9 = int_to_ptr.vmem [resolvable:$false] %s747_s9 }
  0x60   : > { %579 = vmatpush3.bf16.msra.mxu0 %v674_v7  ;;  %v295_v30 = vrot.slane %v290_v27, %v294_v25  ;;  %v300_v32 = vrot.slane %v290_v27, %v299_v28  ;;  %p745_p6 = pnand %p744_p4, %p959_p10  ;;  %s749_s11 = scalar_lea.vmem %s748_s9, 256 }
  0x61   : > { %580 = vmatprep.subr.bf16.mxu0 %v835_v6  ;;  %p750_p12 = scmp.lt.s32.totalorder %s1045_s28, %s748_s9  ;;  %p751_p11 = scmp.lt.s32.totalorder %s749_s11, %s743_s24 }
  0x62   : > { %p746_p8 = pneg %p745_p6 }
  0x63   : > { %p752_p0 = por %p751_p11, %p750_p12 }
  0x64   : > { %581 = vmatpush3.bf16.msra.mxu0 %v675_v8 }
  0x65   : > { %582 = vmatprep.subr.bf16.mxu0 %v835_v6  ;;  %p753_p5 = pnand %p752_p0, %p746_p8 }
  0x68   : > { %583 = vmatpush3.bf16.msra.mxu0 %v676_v9 }
  0x69   : > { %584 = vmatprep.subr.bf16.mxu0 %v835_v6 }
  0x6c   : > { %585 = vmatpush3.bf16.msra.mxu0 %v677_v10 }
  0x6d   : > { %586 = vmatprep.subr.bf16.mxu0 %v835_v6 }
  0x70   : > { %587 = vmatpush3.bf16.msra.mxu0 %v678_v11 }
  0x71   : > { %588 = vmatprep.subr.bf16.mxu0 %v835_v6 }
  0x74   : > { %589 = vmatpush3.bf16.msra.mxu0 %v679_v12 }
  0x75   : > { %590 = vmatprep.subr.bf16.mxu0 %v835_v6 }
  0x78   : > { %591 = vmatpush3.bf16.msra.mxu0 %v680_v13 }
  0xe8   : > { %v270_v1 = vpop.xlane.xlu0 %269 }
  0xe9   : > { %v272_v2 = vmul.f32 0.0078125, %v270_v1 }
  0xeb   : > { %v273_v3 = vsub.f32 %v1026_v0, %v272_v2 }
  0xed   : > { %v274_v4 = vmul.f32 %v273_v3, %v273_v3 }
  0xef   : > { %275 = vadd.xlane.f32.xlu0 %v274_v4 }
 0x17c   : > { %v276_v14 = vpop.xlane.xlu0 %275 }
 0x17d   : > { %v277_v15 = vmul.f32 0.007874016, %v276_v14 }
 0x17f   : > { %681 = vrsqrt.f32 %v277_v15  ;;  %vm280_vm1 = vcmp.eq.f32.partialorder %v277_v15, inf  ;;  %v283_v18 = vand.u32 2147483648, %v277_v15  ;;  %vm282_vm2 = vcmp.eq.f32.partialorder %v277_v15, 0.0 }
 0x189   : > { %v682_v16 = vpop.eup %681 }
 0x18a   : > { %v279_v17 = vmul.f32 %v682_v16, %v277_v15 }
 0x18c   : > { %v281_v19 = vsel %vm280_vm1, %v277_v15, %v279_v17 }
 0x18d   : > { %v284_v20 = vsel %vm282_vm2, %v283_v18, %v281_v19 }
 0x18e   : > { %v285_v21 = vadd.f32 1e-06, %v284_v20 }
 0x190   : > { %683 = vrcp.f32 %v285_v21 }
 0x19a   : > { %v684_v24 = vpop.eup %683 }
 0x19b   : > { %v287_v26 = vmul.f32 %v684_v24, %v285_v21 }
 0x19d   : > { %v288_v29 = vsub.f32 2.0, %v287_v26 }
 0x19f   : > { %v289_v31 = vmul.f32 %v684_v24, %v288_v29 }
 0x1a1   : > { %v291_v33 = vmul.f32 %v289_v31, %v273_v3 }
 0x1a3   : > { %v296_v34 = vmul.f32 %v295_v30, %v291_v33 }
 0x1a5   : > { %v301_v35 = vadd.f32 %v300_v32, %v296_v34 }
 0x1a7   : > { %v302_v36 = vpack.c.bf16 %v301_v35, %v301_v35 }
 0x1a9   : > { %303 = vst [vmem:[#allocation2] sm:$0xf] %v302_v36 }
 0x1b0   : > { %v304_v37 = vld [vmem:[#allocation2] sm:$0xf] }
 0x1b1   : > { %593 = vmatmul.mubr.bf16.vlgmr.msra.gmra.mrb[0].mxu0 %v304_v37 }
 0x284   : > { %v410_v39 = vpop.f32.mrb[0].mxu0 }
 0x285   : > { %v411_v40 = vadd.f32 %v554_v38, %v410_v39  ;;  %v594_v41 = vpop.f32.mrb[1].mxu0 }
 0x286   : > { %v413_v42 = vpop.f32.mrb[2].mxu0 }
 0x287   : > { %v421_v43 = vadd.f32 %v411_v40, %v1026_v0  ;;  %v595_v44 = vpop.f32.mrb[3].mxu0 }
 0x289   : > { %422 = vst [vmem:[%s259_s22] sm:$0xff] %v421_v43 }
 0x28a   : > { %756 = shalt.err (!%p753_p5)
}
 0x28b   : > { %s757_s6 = scalar_lea.hbm %s1043_s13, 128  ;;  %s761_s25 = scalar_lea.hbm %s1096_s4, 256 }
 0x28c   : > { %p758_p9 = scmp.ne.s32.totalorder %s1043_s13, %s757_s6  ;;  %p762_p7 = scmp.lt.u32.totalorder %s1043_s13, %s1096_s4 }
 0x28d   : > { %p763_p3 = scmp.lt.u32.totalorder %s761_s25, %s757_s6  ;;  %p765_p4 = scmp.lt.u32.totalorder %s757_s6, %s1043_s13 }
 0x28e   : > { %p759_p1 = pnand %p758_p9, %p959_p10 }
 0x28f   : > { %p764_p13 = por %p763_p3, %p762_p7 }
 0x290   : > { %p760_p2 = pneg %p759_p1 }
 0x291   : > { %p766_p6 = por %p765_p4, %p764_p13 }
 0x293   : > { %p767_p8 = pnand %p766_p6, %p760_p2 }
 0x295   : > { %770 = shalt.err (!%p767_p8)
}
 0x296   : > { %602 = dma.vmem_to_hbm [thread:$0]  (%p959_p10), %s1045_s28, 128, %s1043_s13, %s424_s18  }
 0x297 PF: > { %s450_s21 = sand.u32 1, %s809_s15   ;;  %p1114_p12 = scmp.ne.s32.totalorder %s1104_s26, 0 }
 0x298   : > { %p1115_p11 = scmp.ge.s32.totalorder %s829_s20, 2  ;;  %s451_s22 = scalar_lea.sflag [#allocation5], %s450_s21 }
 0x29a   : > { %p613_p0 = pnand %p1115_p11, %p1114_p12 }
 0x29c   : > { %804 = dma.done.wait (!%p613_p0), %s451_s22, 128  }
 0x29d   : > { %806 = vsyncadd (!%p613_p0), %s451_s22, 4294967168  ;;  %s21_s20 = sadd.s32 1, %s829_s20   ;;  %s1116_s15 = smov %s813_s16 }
 0x29e   : > { %p18_p5 = scmp.ge.s32.totalorder %s21_s20, 4   ;;  %s1117_s16 = smov %s817_s17 }
 0x29f   : > { %s1118_s17 = smov %s968_s10  ;;  %s1119_s18 = smov %s825_s19 }
 0x2a0   : > { %s1120_s19 = smov %s1122_s5  ;;  %20 = sbr.rel (!%p18_p5) target bundleno = 7 (0x7), region = 94 }
 0x2a7   :  { %456 = vsyncpa [#allocation4], 1 }
 0x2a8   :  { %458 = vsyncpa [#allocation4 + $0x1], 1 }
 0x2a9   :  { %459 = vsyncpa [#allocation7], 1 }
 0x2aa   :  { %460 = vsyncpa [#allocation5], 1 }
 0x2ab   :  { %462 = vsyncpa [#allocation5 + $0x1], 1 }

</bundles_post_ra>
